<compile_context>
chip_gen: v5e
topology: v5e:2x2
jax: 0.10.0
libtpu: 0.0.40
codegen_flags: <defaults>
</compile_context>

<pallas_src>
import functools

import jax
import jax.numpy as jnp
from jax.experimental import pallas as pl
from jax.experimental.pallas import tpu as pltpu

EPS = 1e-5      # nn.BatchNorm1d default eps
LANE = 128      # lane width: pad tiny output dims up to this
SUBLANE = 8     # f32 sublane granularity for batch tiles
MAX_TB = 128    # batch tile (rows) per grid step


def _round_up(n, m):
    return ((n + m - 1) // m) * m


def _fused_mlp_kernel(*refs, nlayers):
    """Whole MLP forward for one batch tile.

    refs layout:
      x:        [TB, In]            f32
      w_0..w_{L-1}:                 bf16  (BN folded in)
      b_hidden: [L, H]              f32   (stacked hidden biases)
      w_out:    [H, Npad]           bf16  (zero-padded, lane-dense)
      b_out:    [1, Npad]           f32
      o:        [TB, Npad]          f32
    """
    x_ref = refs[0]
    w_refs = refs[1:1 + nlayers]
    b_hidden_ref = refs[1 + nlayers]
    w_out_ref = refs[2 + nlayers]
    b_out_ref = refs[3 + nlayers]
    o_ref = refs[4 + nlayers]

    h = x_ref[...]  # f32 activation
    for l in range(nlayers):
        # bf16 operands -> bf16-native MXU path, f32 accumulate.
        z = jnp.dot(h.astype(jnp.bfloat16), w_refs[l][...],
                    preferred_element_type=jnp.float32)
        z = z + b_hidden_ref[pl.ds(l, 1), :]   # f32 bias add (VPU)
        # Dropout == identity in eval mode.
        h = jnp.maximum(z, 0.0)                # f32 ReLU

    out = jnp.dot(h.astype(jnp.bfloat16), w_out_ref[...],
                  preferred_element_type=jnp.float32)
    out = out + b_out_ref[...]
    o_ref[...] = out.astype(o_ref.dtype)


@functools.partial(jax.jit, static_argnames=("ntargets",))
def model_forward(x, folded, *, ntargets):
    """folded = (w_hidden_list[bf16], b_hidden[L,H] f32,
                 w_out[H,Npad] bf16, b_out[1,Npad] f32)."""
    w_hidden, b_hidden, w_out, b_out = folded
    nlayers = len(w_hidden)
    B, nfeat = x.shape
    n_pad = w_out.shape[1]

    # Batch tile: up to 128 rows per grid step, sublane aligned.
    tb = min(MAX_TB, _round_up(B, SUBLANE))
    b_pad = _round_up(B, tb)
    if b_pad != B:
        x = jnp.pad(x, ((0, b_pad - B), (0, 0)))
    grid = (b_pad // tb,)

    inputs = [x, *w_hidden, b_hidden, w_out, b_out]

    in_specs = [pl.BlockSpec((tb, nfeat), lambda i: (i, 0))]         # x tile
    for w in w_hidden:                                               # resident
        in_specs.append(pl.BlockSpec(w.shape, lambda i: (0, 0)))
    in_specs.append(pl.BlockSpec(b_hidden.shape, lambda i: (0, 0)))  # resident
    in_specs.append(pl.BlockSpec(w_out.shape, lambda i: (0, 0)))     # resident
    in_specs.append(pl.BlockSpec(b_out.shape, lambda i: (0, 0)))     # resident
    out_specs = pl.BlockSpec((tb, n_pad), lambda i: (i, 0))

    kernel = functools.partial(_fused_mlp_kernel, nlayers=nlayers)
    out_padded = pl.pallas_call(
        kernel,
        out_shape=jax.ShapeDtypeStruct((b_pad, n_pad), jnp.float32),
        grid=grid,
        in_specs=in_specs,
        out_specs=out_specs,
        compiler_params=pltpu.CompilerParams(
            dimension_semantics=("parallel",),
            vmem_limit_bytes=32 * 1024 * 1024),
    )(*inputs)
    return out_padded[:B, :ntargets]


def fold_inference_params(params):
    """Host-side, done ONCE: fold BN(eval) into each hidden Linear, cast the
    matmul weights to bf16, stack hidden biases, and lane-pad the final
    Linear to a multiple of 128 output lanes."""
    w_hidden, b_hidden = [], []
    for p in params[:-1]:
        scale = p["gamma"] * jax.lax.rsqrt(p["var"] + EPS)
        w_hidden.append((p["w"] * scale[None, :]).astype(jnp.bfloat16))
        b_hidden.append(((p["b"] - p["mean"]) * scale + p["beta"])
                        .astype(jnp.float32))
    b_hidden = jnp.stack(b_hidden, axis=0)  # (nlayers, H)

    p = params[-1]
    w, b = p["w"], p["b"]
    n = w.shape[1]
    n_pad = _round_up(n, LANE)
    if n_pad != n:
        w = jnp.pad(w, ((0, 0), (0, n_pad - n)))
        b = jnp.pad(b, (0, n_pad - n))
    w_out = w.astype(jnp.bfloat16)
    b_out = b.reshape(1, -1).astype(jnp.float32)
    return (w_hidden, b_hidden, w_out, b_out)


def init_params(key, nfeatures, ntargets, nlayers, hidden_size):
    """Deterministic parameter init mimicking PyTorch defaults."""
    params = []
    in_dim = nfeatures
    for _ in range(nlayers):
        key, kw, kb = jax.random.split(key, 3)
        bound = 1.0 / jnp.sqrt(in_dim)
        w = jax.random.uniform(kw, (in_dim, hidden_size), jnp.float32,
                               -bound, bound)
        b = jax.random.uniform(kb, (hidden_size,), jnp.float32, -bound, bound)
        params.append(dict(
            w=w, b=b,
            gamma=jnp.ones((hidden_size,), jnp.float32),
            beta=jnp.zeros((hidden_size,), jnp.float32),
            mean=jnp.zeros((hidden_size,), jnp.float32),
            var=jnp.ones((hidden_size,), jnp.float32)))
        in_dim = hidden_size
    key, kw, kb = jax.random.split(key, 3)
    bound = 1.0 / jnp.sqrt(in_dim)
    w = jax.random.uniform(kw, (in_dim, ntargets), jnp.float32, -bound, bound)
    b = jax.random.uniform(kb, (ntargets,), jnp.float32, -bound, bound)
    params.append(dict(w=w, b=b))
    return params


def reference_forward_f32(x, params):
    """Plain-JAX full-f32 reference (eval semantics, un-folded BN)."""
    h = x
    for p in params[:-1]:
        z = h @ p["w"] + p["b"]
        z = (z - p["mean"]) / jnp.sqrt(p["var"] + EPS) * p["gamma"] + p["beta"]
        h = jnp.maximum(z, 0.0)
    p = params[-1]
    return h @ p["w"] + p["b"]


def reference_forward_folded(x, folded, ntargets):
    """Plain-JAX reference using the SAME folded/bf16 params as the kernel."""
    w_hidden, b_hidden, w_out, b_out = folded
    h = x
    for l, w in enumerate(w_hidden):
        z = jnp.dot(h.astype(jnp.bfloat16), w,
                    preferred_element_type=jnp.float32)
        h = jnp.maximum(z + b_hidden[l][None, :], 0.0)
    out = jnp.dot(h.astype(jnp.bfloat16), w_out,
                  preferred_element_type=jnp.float32) + b_out
    return out[:, :ntargets]


if __name__ == "__main__":
    nfeatures, ntargets, nlayers, hidden_size, dropout = 32, 8, 3, 128, 0.2

    key = jax.random.PRNGKey(0)
    params = init_params(key, nfeatures, ntargets, nlayers, hidden_size)
    folded = fold_inference_params(params)  # host-side, once

    for batch in (16, 200):  # grid=1 (tiny) and grid=2 with batch padding
        key, kx = jax.random.split(key)
        x = jax.random.normal(kx, (batch, nfeatures), jnp.float32)

        out = model_forward(x, folded, ntargets=ntargets)
        out = jax.block_until_ready(out)
        assert out.shape == (batch, ntargets)

        # Tight check vs a JAX reference using the identical folded bf16 params.
        ref_folded = reference_forward_folded(x, folded, ntargets)
        assert jnp.allclose(out, ref_folded, atol=2e-3, rtol=2e-3), \
            "mismatch vs folded-bf16 reference"

        # Loose check vs the full-f32 un-folded reference (bf16 rounding only).
        ref_f32 = reference_forward_f32(x, params)
        assert jnp.allclose(out, ref_f32, atol=5e-2, rtol=5e-2), \
            "mismatch vs f32 reference"

    print("KERNEL_OK")
</pallas_src>

<mosaic_0001>
module attributes {stable_mosaic.version = 11 : i64} {
  func.func @_fused_mlp_kernel(%arg0: i32, %arg1: memref<16x32xf32, #tpu.memory_space<vmem>>, %arg2: memref<32x128xbf16, #tpu.memory_space<vmem>>, %arg3: memref<128x128xbf16, #tpu.memory_space<vmem>>, %arg4: memref<128x128xbf16, #tpu.memory_space<vmem>>, %arg5: memref<3x128xf32, #tpu.memory_space<vmem>>, %arg6: memref<128x128xbf16, #tpu.memory_space<vmem>>, %arg7: memref<1x128xf32, #tpu.memory_space<vmem>>, %arg8: memref<16x128xf32, #tpu.memory_space<vmem>>) attributes {dimension_semantics = [#tpu.dimension_semantics<parallel>], iteration_bounds = array<i64: 1>, scalar_prefetch = 0 : i64, scratch_operands = 0 : i64, tpu.core_type = #tpu.core_type<tc>, window_params = [{transform_indices = @transform_0, window_bounds = array<i64: 16, 32>}, {pipeline_mode = #tpu.pipeline_mode<synchronous>, transform_indices = @transform_1, window_bounds = array<i64: 32, 128>}, {pipeline_mode = #tpu.pipeline_mode<synchronous>, transform_indices = @transform_2, window_bounds = array<i64: 128, 128>}, {pipeline_mode = #tpu.pipeline_mode<synchronous>, transform_indices = @transform_3, window_bounds = array<i64: 128, 128>}, {pipeline_mode = #tpu.pipeline_mode<synchronous>, transform_indices = @transform_4, window_bounds = array<i64: 3, 128>}, {pipeline_mode = #tpu.pipeline_mode<synchronous>, transform_indices = @transform_5, window_bounds = array<i64: 128, 128>}, {pipeline_mode = #tpu.pipeline_mode<synchronous>, transform_indices = @transform_6, window_bounds = array<i64: 1, 128>}, {transform_indices = @transform_7, window_bounds = array<i64: 16, 128>}]} {
    %c0 = arith.constant 0 : index
    %c0_0 = arith.constant 0 : index
    %0 = vector.load %arg1[%c0, %c0_0] : memref<16x32xf32, #tpu.memory_space<vmem>>, vector<16x32xf32>
    %1 = arith.truncf %0 : vector<16x32xf32> to vector<16x32xbf16>
    %c0_1 = arith.constant 0 : index
    %c0_2 = arith.constant 0 : index
    %2 = vector.load %arg2[%c0_1, %c0_2] : memref<32x128xbf16, #tpu.memory_space<vmem>>, vector<32x128xbf16>
    %cst = arith.constant dense<0.000000e+00> : vector<16x128xf32>
    %3 = tpu.matmul %1, %2, %cst {dimension_numbers = #tpu.dot_dimension_numbers<[1], [0], [0], [1], [0, 0, 1, 1], [], []>} : vector<16x32xbf16>, vector<32x128xbf16>, vector<16x128xf32> -> vector<16x128xf32>
    %c0_3 = arith.constant 0 : index
    %c0_4 = arith.constant 0 : index
    %4 = vector.load %arg5[%c0_3, %c0_4] : memref<3x128xf32, #tpu.memory_space<vmem>>, vector<1x128xf32>
    %5 = vector.broadcast %4 : vector<1x128xf32> to vector<16x128xf32>
    %6 = arith.addf %3, %5 : vector<16x128xf32>
    %cst_5 = arith.constant 0.000000e+00 : f32
    %7 = vector.broadcast %cst_5 : f32 to vector<16x128xf32>
    %8 = arith.maximumf %6, %7 : vector<16x128xf32>
    %9 = arith.truncf %8 : vector<16x128xf32> to vector<16x128xbf16>
    %c0_6 = arith.constant 0 : index
    %c0_7 = arith.constant 0 : index
    %10 = vector.load %arg3[%c0_6, %c0_7] : memref<128x128xbf16, #tpu.memory_space<vmem>>, vector<128x128xbf16>
    %cst_8 = arith.constant dense<0.000000e+00> : vector<16x128xf32>
    %11 = tpu.matmul %9, %10, %cst_8 {dimension_numbers = #tpu.dot_dimension_numbers<[1], [0], [0], [1], [0, 0, 1, 1], [], []>} : vector<16x128xbf16>, vector<128x128xbf16>, vector<16x128xf32> -> vector<16x128xf32>
    %c1 = arith.constant 1 : index
    %c0_9 = arith.constant 0 : index
    %12 = vector.load %arg5[%c1, %c0_9] : memref<3x128xf32, #tpu.memory_space<vmem>>, vector<1x128xf32>
    %13 = vector.broadcast %12 : vector<1x128xf32> to vector<16x128xf32>
    %14 = arith.addf %11, %13 : vector<16x128xf32>
    %cst_10 = arith.constant 0.000000e+00 : f32
    %15 = vector.broadcast %cst_10 : f32 to vector<16x128xf32>
    %16 = arith.maximumf %14, %15 : vector<16x128xf32>
    %17 = arith.truncf %16 : vector<16x128xf32> to vector<16x128xbf16>
    %c0_11 = arith.constant 0 : index
    %c0_12 = arith.constant 0 : index
    %18 = vector.load %arg4[%c0_11, %c0_12] : memref<128x128xbf16, #tpu.memory_space<vmem>>, vector<128x128xbf16>
    %cst_13 = arith.constant dense<0.000000e+00> : vector<16x128xf32>
    %19 = tpu.matmul %17, %18, %cst_13 {dimension_numbers = #tpu.dot_dimension_numbers<[1], [0], [0], [1], [0, 0, 1, 1], [], []>} : vector<16x128xbf16>, vector<128x128xbf16>, vector<16x128xf32> -> vector<16x128xf32>
    %c2 = arith.constant 2 : index
    %c0_14 = arith.constant 0 : index
    %20 = vector.load %arg5[%c2, %c0_14] : memref<3x128xf32, #tpu.memory_space<vmem>>, vector<1x128xf32>
    %21 = vector.broadcast %20 : vector<1x128xf32> to vector<16x128xf32>
    %22 = arith.addf %19, %21 : vector<16x128xf32>
    %cst_15 = arith.constant 0.000000e+00 : f32
    %23 = vector.broadcast %cst_15 : f32 to vector<16x128xf32>
    %24 = arith.maximumf %22, %23 : vector<16x128xf32>
    %25 = arith.truncf %24 : vector<16x128xf32> to vector<16x128xbf16>
    %c0_16 = arith.constant 0 : index
    %c0_17 = arith.constant 0 : index
    %26 = vector.load %arg6[%c0_16, %c0_17] : memref<128x128xbf16, #tpu.memory_space<vmem>>, vector<128x128xbf16>
    %cst_18 = arith.constant dense<0.000000e+00> : vector<16x128xf32>
    %27 = tpu.matmul %25, %26, %cst_18 {dimension_numbers = #tpu.dot_dimension_numbers<[1], [0], [0], [1], [0, 0, 1, 1], [], []>} : vector<16x128xbf16>, vector<128x128xbf16>, vector<16x128xf32> -> vector<16x128xf32>
    %c0_19 = arith.constant 0 : index
    %c0_20 = arith.constant 0 : index
    %28 = vector.load %arg7[%c0_19, %c0_20] : memref<1x128xf32, #tpu.memory_space<vmem>>, vector<1x128xf32>
    %29 = vector.broadcast %28 : vector<1x128xf32> to vector<16x128xf32>
    %30 = arith.addf %27, %29 : vector<16x128xf32>
    %c0_21 = arith.constant 0 : index
    %c0_22 = arith.constant 0 : index
    %31 = vector.load %arg8[%c0_21, %c0_22] : memref<16x128xf32, #tpu.memory_space<vmem>>, vector<16x128xf32>
    tpu.vector_store %arg8[%c0_21, %c0_22], %30 {strides = array<i32>} : memref<16x128xf32, #tpu.memory_space<vmem>>, vector<16x128xf32>,
    return
  }
  func.func @transform_0(%arg0: i32) -> (i32, i32) {
    %c0_i32 = arith.constant 0 : i32
    %c0_i32_0 = arith.constant 0 : i32
    return %arg0, %c0_i32 : i32, i32
  }
  func.func @transform_1(%arg0: i32) -> (i32, i32) {
    %c0_i32 = arith.constant 0 : i32
    %c0_i32_0 = arith.constant 0 : i32
    %c0_i32_1 = arith.constant 0 : i32
    return %c0_i32, %c0_i32_0 : i32, i32
  }
  func.func @transform_2(%arg0: i32) -> (i32, i32) {
    %c0_i32 = arith.constant 0 : i32
    %c0_i32_0 = arith.constant 0 : i32
    %c0_i32_1 = arith.constant 0 : i32
    return %c0_i32, %c0_i32_0 : i32, i32
  }
  func.func @transform_3(%arg0: i32) -> (i32, i32) {
    %c0_i32 = arith.constant 0 : i32
    %c0_i32_0 = arith.constant 0 : i32
    %c0_i32_1 = arith.constant 0 : i32
    return %c0_i32, %c0_i32_0 : i32, i32
  }
  func.func @transform_4(%arg0: i32) -> (i32, i32) {
    %c0_i32 = arith.constant 0 : i32
    %c0_i32_0 = arith.constant 0 : i32
    %c0_i32_1 = arith.constant 0 : i32
    return %c0_i32, %c0_i32_0 : i32, i32
  }
  func.func @transform_5(%arg0: i32) -> (i32, i32) {
    %c0_i32 = arith.constant 0 : i32
    %c0_i32_0 = arith.constant 0 : i32
    %c0_i32_1 = arith.constant 0 : i32
    return %c0_i32, %c0_i32_0 : i32, i32
  }
  func.func @transform_6(%arg0: i32) -> (i32, i32) {
    %c0_i32 = arith.constant 0 : i32
    %c0_i32_0 = arith.constant 0 : i32
    %c0_i32_1 = arith.constant 0 : i32
    return %c0_i32, %c0_i32_0 : i32, i32
  }
  func.func @transform_7(%arg0: i32) -> (i32, i32) {
    %c0_i32 = arith.constant 0 : i32
    %c0_i32_0 = arith.constant 0 : i32
    return %arg0, %c0_i32 : i32, i32
  }
}

</mosaic_0001>

<bundles_post_ra>
// kernel: model_forward.1
= control target key start
LH: loop header
LB: loop body
LE: loop exit
PB: predicated region body
PF: predicated region fallthrough
CT: control target
= control target key end

     0   :  { %12 = vsyncpa [#allocation3], 0  ;;  %s805_s0 = inlined_call_operand.hbm [shape: f32[16,32], index: 0, kind: input, shape index: {}]   ;;  %s806_s1 = inlined_call_operand.hbm [shape: bf16[32,128], index: 1, kind: input, shape index: {}]   ;;  %s807_s2 = inlined_call_operand.hbm [shape: bf16[128,128], index: 2, kind: input, shape index: {}]   ;;  %s808_s3 = inlined_call_operand.hbm [shape: bf16[128,128], index: 3, kind: input, shape index: {}]   ;;  %s809_s4 = inlined_call_operand.hbm [shape: f32[3,128], index: 4, kind: input, shape index: {}]   ;;  %s810_s5 = inlined_call_operand.hbm [shape: bf16[128,128], index: 5, kind: input, shape index: {}]   ;;  %s811_s6 = inlined_call_operand.vmem [shape: f32[1,128], index: 6, kind: input, shape index: {}]   ;;  %s812_s7 = inlined_call_operand.vmem [shape: f32[16,128], index: 7, kind: output, shape index: {}]  }
   0x1   :  { %13 = vsyncpa [#allocation5], 0 }
   0x2   :  { %14 = vsyncpa [#allocation8], 0  ;;  %s33_s26 = sshll.u32 %s806_s1, 4  ;;  %s34_s26 = int_to_ptr.hbm [resolvable:$true] %s33_s26 }
   0x3   :  { %15 = vsyncpa [#allocation11], 0  ;;  %s716_s27 = smov [#allocation4]   ;;  %s59_s8 = sshll.u32 %s808_s3, 4  ;;  %s60_s8 = int_to_ptr.hbm [resolvable:$true] %s59_s8 }
   0x4   :  { %s35_s28 = sshll.u32 %s716_s27, 4  ;;  %s717_s9 = smov 64   ;;  %s36_s28 = int_to_ptr.vmem [resolvable:$true] %s35_s28 }
   0x5   :  { %s718_s10 = smov 4   ;;  %s719_s11 = smov [#allocation7]  }
   0x6   :  { %41 = dma.hbm_to_vmem [thread:$0]  %s34_s26, 256, %s36_s28, [#allocation5], %s717_s9, %s717_s9, %s718_s10  }
   0x7   :  { %s61_s12 = sshll.u32 %s719_s11, 4  ;;  %s20_s14 = sshll.u32 %s805_s0, 4  ;;  %s62_s12 = int_to_ptr.vmem [resolvable:$true] %s61_s12  ;;  %s21_s14 = int_to_ptr.hbm [resolvable:$true] %s20_s14 }
   0x8   :  { %67 = dma.hbm_to_vmem [thread:$0]  %s60_s8, 1024, %s62_s12, [#allocation8], %s717_s9, %s717_s9, %s718_s10  }
   0x9   :  { %s720_s3 = smov [#allocation2]   ;;  %s46_s18 = sshll.u32 %s807_s2, 4  ;;  %s47_s18 = int_to_ptr.hbm [resolvable:$true] %s46_s18 }
   0xa   :  { %s22_s15 = sshll.u32 %s720_s3, 4  ;;  %s721_s19 = smov 128   ;;  %s23_s15 = int_to_ptr.vmem [resolvable:$true] %s22_s15 }
   0xb   :  { %s722_s20 = smov 8   ;;  %s723_s21 = smov [#allocation6]  }
   0xc   :  { %28 = dma.hbm_to_vmem [thread:$0]  %s21_s14, 256, %s23_s15, [#allocation3], %s721_s19, %s721_s19, %s722_s20  }
   0xd   :  { %s48_s22 = sshll.u32 %s723_s21, 4  ;;  %s73_s24 = sshll.u32 %s809_s4, 4  ;;  %s49_s22 = int_to_ptr.vmem [resolvable:$true] %s48_s22  ;;  %s74_s24 = int_to_ptr.hbm [resolvable:$true] %s73_s24 }
   0xe   :  { %54 = dma.hbm_to_vmem [thread:$0]  %s47_s18, 1024, %s49_s22, [#allocation5], %s717_s9, %s717_s9, %s718_s10  }
   0xf   :  { %s83_s2 = sshll.u32 %s810_s5, 4  ;;  %s724_s27 = smov [#allocation9]   ;;  %s84_s2 = int_to_ptr.hbm [resolvable:$true] %s83_s2 }
  0x10   :  { %s75_s28 = sshll.u32 %s724_s27, 4  ;;  %s725_s29 = smov [#allocation10]   ;;  %s76_s28 = int_to_ptr.vmem [resolvable:$true] %s75_s28 }
  0x11   :  { %78 = dma.hbm_to_vmem [thread:$0]  %s74_s24, 64, %s76_s28, [#allocation8]  }
  0x12   :  { %s85_s30 = sshll.u32 %s725_s29, 4  ;;  %s86_s30 = int_to_ptr.vmem [resolvable:$true] %s85_s30 }
  0x13   :  { %91 = dma.hbm_to_vmem [thread:$0]  %s84_s2, 1024, %s86_s30, [#allocation11], %s717_s9, %s717_s9, %s718_s10  }
  0x14   :  { %708 = dma.done.wait [#allocation3], 256  }
  0x15   :  { %709 = vsyncadd [#allocation3], 4294967040 }
  0x16   :  { %710 = dma.done.wait [#allocation5], 1280  }
  0x17   :  { %711 = vsyncadd [#allocation5], 4294966016 }
  0x18   :  { %712 = dma.done.wait [#allocation8], 1088  }
  0x19   :  { %713 = vsyncadd [#allocation8], 4294966208 }
  0x1a   :  { %714 = dma.done.wait [#allocation11], 1024  }
  0x1b   :  { %715 = vsyncadd [#allocation11], 4294966272  ;;  %v525_v0 = vld [vmem:[#allocation4 + $0x8] sm:$0xff]  ;;  %v524_v1 = vld [vmem:[#allocation4] sm:$0xff]  ;;  %vm140_vm0 = vcmask 261120  }
  0x1c   :  { %v533_v2 = vld [vmem:[#allocation6 + $0x38] sm:$0xff]  ;;  %150 = vmatpush.bf16.msra.mxu0 %v525_v0  ;;  %v119_v3 = vld [vmem:[#allocation2] sm:$0xff]  ;;  %v120_v4 = vld [vmem:[#allocation2 + $0x8] sm:$0xff] }
  0x1d   :  { %227 = vmatpush.bf16.msra.mxu1 %v533_v2  ;;  %v532_v5 = vld [vmem:[#allocation6 + $0x30] sm:$0xff]  ;;  %v121_v6 = vpack.c.bf16 %v120_v4, %v119_v3  ;;  %v531_v7 = vld [vmem:[#allocation6 + $0x28] sm:$0xff]  ;;  %v530_v8 = vld [vmem:[#allocation6 + $0x20] sm:$0xff] }
  0x1e   :  { %v529_v9 = vld [vmem:[#allocation6 + $0x18] sm:$0xff]  ;;  %v528_v10 = vld [vmem:[#allocation6 + $0x10] sm:$0xff]  ;;  %v527_v11 = vld [vmem:[#allocation6 + $0x8] sm:$0xff] }
  0x1f   :  { %v526_v12 = vld [vmem:[#allocation6] sm:$0xff]  ;;  %v541_v13 = vld [vmem:[#allocation7 + $0x38] sm:$0xff]  ;;  %v540_v14 = vld [vmem:[#allocation7 + $0x30] sm:$0xff] }
  0x20   :  { %151 = vmatpush.bf16.msra.mxu0 %v524_v1  ;;  %310 = vmatpush.bf16.msra.mxu2 %v541_v13  ;;  %v539_v15 = vld [vmem:[#allocation7 + $0x28] sm:$0xff]  ;;  %v538_v16 = vld [vmem:[#allocation7 + $0x20] sm:$0xff]  ;;  %v537_v25 = vld [vmem:[#allocation7 + $0x18] sm:$0xff] }
  0x21   :  { %228 = vmatpush.bf16.msra.mxu1 %v532_v5  ;;  %v560_v18 = vld [vmem:[#allocation9] ss:$0 sm:$0xff]  ;;  %v536_v26 = vld [vmem:[#allocation7 + $0x10] sm:$0xff]  ;;  %v535_v27 = vld [vmem:[#allocation7 + $0x8] sm:$0xff] }
  0x22   :  { %v534_v28 = vld [vmem:[#allocation7] sm:$0xff]  ;;  %v548_v30 = vld [vmem:[#allocation10 + $0x30] sm:$0xff]  ;;  %v547_v31 = vld [vmem:[#allocation10 + $0x28] sm:$0xff] }
  0x23   :  { %427 = vmatmul.msk.bf16.vlgmr.msra.gmra.mxu0 %vm140_vm0, %v121_v6  ;;  %v549_v29 = vld [vmem:[#allocation10 + $0x38] sm:$0xff]  ;;  %v546_v32 = vld [vmem:[#allocation10 + $0x20] sm:$0xff]  ;;  %v544_v42 = vld [vmem:[#allocation10 + $0x10] sm:$0xff] }
  0x24   :  { %311 = vmatpush.bf16.msra.mxu2 %v540_v14  ;;  %395 = vmatpush.bf16.msra.mxu3 %v549_v29  ;;  %v561_v34 = vld [vmem:[#allocation9 + $0x1] ss:$0 sm:$0xff]  ;;  %v543_v43 = vld [vmem:[#allocation10 + $0x8] sm:$0xff]  ;;  %v542_v44 = vld [vmem:[#allocation10] sm:$0xff] }
  0x25   :  { %229 = vmatpush.bf16.msra.mxu1 %v531_v7  ;;  %v545_v41 = vld [vmem:[#allocation10 + $0x18] sm:$0xff] }
  0x26   :  { %v562_v46 = vld [vmem:[#allocation9 + $0x2] ss:$0 sm:$0xff]  ;;  %v563_v53 = vld [vmem:[%s811_s6] ss:$0 sm:$0xff] }
  0x28   :  { %312 = vmatpush.bf16.msra.mxu2 %v539_v15  ;;  %396 = vmatpush.bf16.msra.mxu3 %v548_v30 }
  0x29   :  { %230 = vmatpush.bf16.msra.mxu1 %v530_v8 }
  0x2c   :  { %313 = vmatpush.bf16.msra.mxu2 %v538_v16  ;;  %397 = vmatpush.bf16.msra.mxu3 %v547_v31 }
  0x2d   :  { %231 = vmatpush.bf16.msra.mxu1 %v529_v9 }
  0x30   :  { %314 = vmatpush.bf16.msra.mxu2 %v537_v25  ;;  %398 = vmatpush.bf16.msra.mxu3 %v546_v32 }
  0x31   :  { %232 = vmatpush.bf16.msra.mxu1 %v528_v10 }
  0x34   :  { %315 = vmatpush.bf16.msra.mxu2 %v536_v26  ;;  %399 = vmatpush.bf16.msra.mxu3 %v545_v41 }
  0x35   :  { %233 = vmatpush.bf16.msra.mxu1 %v527_v11 }
  0x38   :  { %316 = vmatpush.bf16.msra.mxu2 %v535_v27  ;;  %400 = vmatpush.bf16.msra.mxu3 %v544_v42 }
  0x39   :  { %234 = vmatpush.bf16.msra.mxu1 %v526_v12 }
  0x3c   :  { %317 = vmatpush.bf16.msra.mxu2 %v534_v28  ;;  %401 = vmatpush.bf16.msra.mxu3 %v543_v43 }
  0x40   :  { %402 = vmatpush.bf16.msra.mxu3 %v542_v44 }
  0xa0   :  { %v153_v17 = vpop.f32.mrf.mxu0 }
  0xa1   :  { %v154_v19 = vadd.f32 %v560_v18, %v153_v17 }
  0xa3   :  { %v158_v22 = vmax.f32 %v154_v19, 0.0 }
  0xa8   :  { %v155_v20 = vpop.f32.mrf.mxu0 }
  0xa9   :  { %v156_v21 = vadd.f32 %v560_v18, %v155_v20 }
  0xab   :  { %v159_v23 = vmax.f32 %v156_v21, 0.0 }
  0xad   :  { %v160_v24 = vpack.c.bf16 %v159_v23, %v158_v22 }
  0xaf   :  { %235 = vmatmul.bf16.vlgmr.msra.gmra.mxu1 %v160_v24 }
 0x12c   :  { %v236_v33 = vpop.f32.mrf.mxu1 }
 0x12d   :  { %v237_v35 = vadd.f32 %v561_v34, %v236_v33 }
 0x12f   :  { %v241_v38 = vmax.f32 %v237_v35, 0.0 }
 0x134   :  { %v238_v36 = vpop.f32.mrf.mxu1 }
 0x135   :  { %v239_v37 = vadd.f32 %v561_v34, %v238_v36 }
 0x137   :  { %v242_v39 = vmax.f32 %v239_v37, 0.0 }
 0x139   :  { %v243_v40 = vpack.c.bf16 %v242_v39, %v241_v38 }
 0x13b   :  { %318 = vmatmul.bf16.vlgmr.msra.gmra.mxu2 %v243_v40 }
 0x1be   :  { %v319_v45 = vpop.f32.mrf.mxu2 }
 0x1bf   :  { %v320_v47 = vadd.f32 %v562_v46, %v319_v45 }
 0x1c1   :  { %v324_v50 = vmax.f32 %v320_v47, 0.0 }
 0x1c6   :  { %v321_v48 = vpop.f32.mrf.mxu2 }
 0x1c7   :  { %v322_v49 = vadd.f32 %v562_v46, %v321_v48 }
 0x1c9   :  { %v325_v51 = vmax.f32 %v322_v49, 0.0 }
 0x1cb   :  { %v326_v52 = vpack.c.bf16 %v325_v51, %v324_v50 }
 0x1cd   :  { %403 = vmatmul.bf16.vlgmr.msra.gmra.mxu3 %v326_v52 }
 0x250   :  { %v404_v54 = vpop.f32.mrf.mxu3 }
 0x251   :  { %v405_v55 = vadd.f32 %v563_v53, %v404_v54 }
 0x253   :  { %409 = vst [vmem:[%s812_s7] sm:$0xff] %v405_v55 }
 0x258   :  { %v406_v56 = vpop.f32.mrf.mxu3 }
 0x259   :  { %v407_v57 = vadd.f32 %v563_v53, %v406_v56 }
 0x25b   :  { %410 = vst [vmem:[%s812_s7 + $0x8] sm:$0xff] %v407_v57 }
 0x25c   :  { %415 = vsyncpa [#allocation3], 1 }
 0x25d   :  { %416 = vsyncpa [#allocation5], 1 }
 0x25e   :  { %417 = vsyncpa [#allocation8], 1 }
 0x25f   :  { %418 = vsyncpa [#allocation11], 1 }

</bundles_post_ra>
